<compile_context>
chip_gen: v7x
topology: tpu7x:2x2x1
jax: 0.10.0
libtpu: 0.0.40
codegen_flags: <defaults>
</compile_context>

<pallas_src>
import functools
import math

import jax
import jax.numpy as jnp
from jax.experimental import pallas as pl
from jax.experimental.pallas import tpu as pltpu


def _round_up(x, m):
    return (x + m - 1) // m * m


# ---------------------------------------------------------------------------
# Kernel A: per-layer feature transform  H = X @ W   (bf16 inputs, f32 acc)
# ---------------------------------------------------------------------------
def _feat_transform_kernel(x_ref, w_ref, h_ref):
    h = jnp.dot(
        x_ref[...].astype(jnp.bfloat16),
        w_ref[...],
        preferred_element_type=jnp.float32,
    )
    h_ref[...] = h.astype(h_ref.dtype)


def feat_transform(x, w_bf16, *, tm):
    """H = X @ W, row-tiled. x: [N_pad, Fin_pad] f32, w: [Fin_pad, Fout_pad] bf16."""
    n_pad, f_in = x.shape
    f_out = w_bf16.shape[1]
    cost = pl.CostEstimate(
        flops=2 * n_pad * f_in * f_out,
        transcendentals=0,
        bytes_accessed=n_pad * f_in * 4 + f_in * f_out * 2 + n_pad * f_out * 2,
    )
    return pl.pallas_call(
        _feat_transform_kernel,
        out_shape=jax.ShapeDtypeStruct((n_pad, f_out), jnp.bfloat16),
        grid_spec=pltpu.PrefetchScalarGridSpec(
            num_scalar_prefetch=0,
            grid=(n_pad // tm,),
            in_specs=[
                pl.BlockSpec((tm, f_in), lambda i: (i, 0)),
                pl.BlockSpec((f_in, f_out), lambda i: (0, 0)),
            ],
            out_specs=pl.BlockSpec((tm, f_out), lambda i: (i, 0)),
        ),
        compiler_params=pltpu.CompilerParams(dimension_semantics=("parallel",)),
        cost_estimate=cost,
    )(x, w_bf16)


# ---------------------------------------------------------------------------
# Kernel B: tiled aggregation  Z = ReLU(A_hat @ H + b)
#   grid = (row tiles "parallel", reduction tiles "arbitrary")
# ---------------------------------------------------------------------------
def _aggregate_kernel(adj_ref, h_ref, b_ref, z_ref, acc_ref):
    k = pl.program_id(1)

    @pl.when(k == 0)
    def _():
        acc_ref[...] = jnp.zeros_like(acc_ref)

    # bf16 x bf16 -> f32 accumulate on the MXU
    acc_ref[...] += jnp.dot(
        adj_ref[...], h_ref[...], preferred_element_type=jnp.float32
    )

    @pl.when(k == pl.num_programs(1) - 1)
    def _():
        z = acc_ref[...] + b_ref[...]            # fused bias + ReLU epilogue (f32)
        z_ref[...] = jnp.maximum(z, 0.0).astype(z_ref.dtype)


def aggregate(adj_bf16, h_bf16, b_f32, *, tm, tk):
    n_pad = adj_bf16.shape[0]
    f_out = h_bf16.shape[1]
    grid = (n_pad // tm, n_pad // tk)
    cost = pl.CostEstimate(
        flops=2 * n_pad * n_pad * f_out,
        transcendentals=0,
        bytes_accessed=(
            n_pad * n_pad * 2                      # adjacency (bf16), read once
            + n_pad * f_out * 2 * grid[0]          # H re-read per row tile
            + n_pad * f_out * 4                    # f32 output
        ),
    )
    return pl.pallas_call(
        _aggregate_kernel,
        out_shape=jax.ShapeDtypeStruct((n_pad, f_out), jnp.float32),
        grid_spec=pltpu.PrefetchScalarGridSpec(
            num_scalar_prefetch=0,
            grid=grid,
            in_specs=[
                pl.BlockSpec((tm, tk), lambda i, k: (i, k)),       # A_hat tile
                pl.BlockSpec((tk, f_out), lambda i, k: (k, 0)),    # H k-slab
                pl.BlockSpec((1, f_out), lambda i, k: (0, 0)),     # bias
            ],
            out_specs=pl.BlockSpec((tm, f_out), lambda i, k: (i, 0)),
            scratch_shapes=[pltpu.VMEM((tm, f_out), jnp.float32)],
        ),
        compiler_params=pltpu.CompilerParams(
            dimension_semantics=("parallel", "arbitrary")
        ),
        cost_estimate=cost,
    )(adj_bf16, h_bf16, b_f32)


# ---------------------------------------------------------------------------
# Glue: dense symmetric-normalized adjacency (gcn_norm with self-loops)
# ---------------------------------------------------------------------------
def build_norm_adj(edge_index, edge_weight, num_nodes):
    row, col = edge_index[0], edge_index[1]
    if edge_weight is None:
        edge_weight = jnp.ones((row.shape[0],), dtype=jnp.float32)
    loop = jnp.arange(num_nodes, dtype=edge_index.dtype)
    row = jnp.concatenate([row, loop])
    col = jnp.concatenate([col, loop])
    w = jnp.concatenate([edge_weight, jnp.ones((num_nodes,), jnp.float32)])
    deg = jnp.zeros((num_nodes,), jnp.float32).at[col].add(w)
    dinv = jnp.where(deg > 0, 1.0 / jnp.sqrt(deg), 0.0)
    norm = dinv[row] * w * dinv[col]
    # out[target] += norm * x[source]  ->  A_hat[col, row] = norm
    adj = jnp.zeros((num_nodes, num_nodes), jnp.float32).at[col, row].add(norm)
    return adj


# ---------------------------------------------------------------------------
# GConv forward: stack of (GCNConv + ReLU) layers
# ---------------------------------------------------------------------------
@functools.partial(jax.jit, static_argnames=("tm", "tk"))
def gconv_forward(x, edge_index, edge_weight, weights, biases, *, tm=256, tk=256):
    n, f_in = x.shape

    # Adapt tile sizes to the (lane-padded) graph size so tiny graphs are not
    # padded up to 256 rows; tiles stay multiples of 128.
    base = _round_up(n, 128)
    tm_eff = min(tm, base)
    tk_eff = min(tk, base)
    n_pad = _round_up(n, math.lcm(tm_eff, tk_eff))

    # normalized adjacency, zero-padded and cast to bf16 (built once, reused)
    adj = build_norm_adj(edge_index, edge_weight, n)
    adj_p = (
        jnp.zeros((n_pad, n_pad), jnp.float32).at[:n, :n].set(adj)
    ).astype(jnp.bfloat16)

    # zero-pad node features to 128-lane feature width
    f_in_pad = _round_up(f_in, 128)
    z = jnp.zeros((n_pad, f_in_pad), jnp.float32).at[:n, :f_in].set(x)

    for w, b in zip(weights, biases):
        fi, fo = w.shape
        fi_pad, fo_pad = _round_up(fi, 128), _round_up(fo, 128)
        w_p = (
            jnp.zeros((fi_pad, fo_pad), jnp.float32).at[:fi, :fo].set(w)
        ).astype(jnp.bfloat16)
        b_p = jnp.zeros((1, fo_pad), jnp.float32).at[:, :fo].set(b.reshape(1, -1))

        h = feat_transform(z, w_p, tm=tm_eff)               # [N_pad, Fout_pad] bf16
        z = aggregate(adj_p, h, b_p, tm=tm_eff, tk=tk_eff)  # [N_pad, Fout_pad] f32

    return z[:n, : weights[-1].shape[1]]


def init_params(key, input_dim, hidden_dim, num_layers):
    """Glorot-style weight init, zero bias (matches PyG reset)."""
    weights, biases = [], []
    dims = [input_dim] + [hidden_dim] * num_layers
    for i in range(num_layers):
        key, sub = jax.random.split(key)
        fan_in, fan_out = dims[i], dims[i + 1]
        limit = jnp.sqrt(6.0 / (fan_in + fan_out))
        w = jax.random.uniform(sub, (fan_in, fan_out), jnp.float32, -limit, limit)
        b = jnp.zeros((1, fan_out), jnp.float32)
        weights.append(w)
        biases.append(b)
    return weights, biases


if __name__ == "__main__":
    # small graph: 16 nodes, input_dim=8, hidden_dim=32, num_layers=2
    N, INPUT_DIM, HIDDEN_DIM, NUM_LAYERS = 16, 8, 32, 2

    key = jax.random.PRNGKey(0)
    k_x, k_w, k_ew = jax.random.split(key, 3)

    x = jax.random.normal(k_x, (N, INPUT_DIM), jnp.float32)

    # deterministic ring graph (both directions)
    src = jnp.arange(N, dtype=jnp.int32)
    dst = (src + 1) % N
    edge_index = jnp.stack(
        [jnp.concatenate([src, dst]), jnp.concatenate([dst, src])], axis=0
    )
    edge_weight = jax.random.uniform(
        k_ew, (edge_index.shape[1],), jnp.float32, 0.5, 1.5
    )

    weights, biases = init_params(k_w, INPUT_DIM, HIDDEN_DIM, NUM_LAYERS)

    out = gconv_forward(x, edge_index, edge_weight, weights, biases)
    jax.block_until_ready(out)

    # pure-JAX f32 reference of the same forward pass
    adj_ref = build_norm_adj(edge_index, edge_weight, N)
    ref = x
    for w, b in zip(weights, biases):
        ref = jnp.maximum(adj_ref @ (ref @ w) + b, 0.0)

    assert out.shape == (N, HIDDEN_DIM)
    assert bool(jnp.all(jnp.isfinite(out)))
    # bf16 MXU inputs -> small drift vs f32 reference is expected
    assert bool(jnp.allclose(out, ref, atol=5e-2, rtol=5e-2))
    print("KERNEL_OK")
</pallas_src>

<mosaic_0001>
module attributes {stable_mosaic.version = 11 : i64} {
  func.func private @main(%arg0: i32) attributes {dimension_semantics = [#tpu.dimension_semantics<core_parallel>], iteration_bounds = array<i64: 2>, tpu.core_type = #tpu.core_type<sc_scalar_subcore>, window_params = []} {
    return
  }
}

module attributes {stable_mosaic.version = 11 : i64} {
  func.func private @main(%arg0: i32) attributes {dimension_semantics = [#tpu.dimension_semantics<core_parallel>], iteration_bounds = array<i64: 2>, tpu.core_type = #tpu.core_type<sc_scalar_subcore>, window_params = []} {
    return
  }
}

module attributes {stable_mosaic.version = 11 : i64} {
  func.func @_feat_transform_kernel(%arg0: i32, %arg1: memref<128x128xf32, #tpu.memory_space<vmem>>, %arg2: memref<128x128xbf16, #tpu.memory_space<vmem>>, %arg3: memref<128x128xbf16, #tpu.memory_space<vmem>>) attributes {dimension_semantics = [#tpu.dimension_semantics<parallel>], iteration_bounds = array<i64: 1>, scalar_prefetch = 0 : i64, scratch_operands = 0 : i64, tpu.core_type = #tpu.core_type<tc>, window_params = [{transform_indices = @transform_0, window_bounds = array<i64: 128, 128>}, {pipeline_mode = #tpu.pipeline_mode<synchronous>, transform_indices = @transform_1, window_bounds = array<i64: 128, 128>}, {transform_indices = @transform_2, window_bounds = array<i64: 128, 128>}]} {
    %c0 = arith.constant 0 : index
    %c0_0 = arith.constant 0 : index
    %0 = vector.load %arg1[%c0, %c0_0] : memref<128x128xf32, #tpu.memory_space<vmem>>, vector<128x128xf32>
    %1 = arith.truncf %0 : vector<128x128xf32> to vector<128x128xbf16>
    %c0_1 = arith.constant 0 : index
    %c0_2 = arith.constant 0 : index
    %2 = vector.load %arg2[%c0_1, %c0_2] : memref<128x128xbf16, #tpu.memory_space<vmem>>, vector<128x128xbf16>
    %cst = arith.constant dense<0.000000e+00> : vector<128x128xf32>
    %3 = tpu.matmul %1, %2, %cst {dimension_numbers = #tpu.dot_dimension_numbers<[1], [0], [0], [1], [0, 0, 1, 1], [], []>} : vector<128x128xbf16>, vector<128x128xbf16>, vector<128x128xf32> -> vector<128x128xf32>
    %4 = arith.truncf %3 : vector<128x128xf32> to vector<128x128xbf16>
    %c0_3 = arith.constant 0 : index
    %c0_4 = arith.constant 0 : index
    %5 = vector.load %arg3[%c0_3, %c0_4] : memref<128x128xbf16, #tpu.memory_space<vmem>>, vector<128x128xbf16>
    tpu.vector_store %arg3[%c0_3, %c0_4], %4 {strides = array<i32>} : memref<128x128xbf16, #tpu.memory_space<vmem>>, vector<128x128xbf16>,
    return
  }
  func.func @transform_0(%arg0: i32) -> (i32, i32) {
    %c0_i32 = arith.constant 0 : i32
    %c0_i32_0 = arith.constant 0 : i32
    return %arg0, %c0_i32 : i32, i32
  }
  func.func @transform_1(%arg0: i32) -> (i32, i32) {
    %c0_i32 = arith.constant 0 : i32
    %c0_i32_0 = arith.constant 0 : i32
    %c0_i32_1 = arith.constant 0 : i32
    return %c0_i32, %c0_i32_0 : i32, i32
  }
  func.func @transform_2(%arg0: i32) -> (i32, i32) {
    %c0_i32 = arith.constant 0 : i32
    %c0_i32_0 = arith.constant 0 : i32
    return %arg0, %c0_i32 : i32, i32
  }
}

module attributes {stable_mosaic.version = 11 : i64} {
  func.func @_aggregate_kernel(%arg0: i32, %arg1: i32, %arg2: memref<128x128xbf16, #tpu.memory_space<vmem>>, %arg3: memref<128x128xbf16, #tpu.memory_space<vmem>>, %arg4: memref<1x128xf32, #tpu.memory_space<vmem>>, %arg5: memref<128x128xf32, #tpu.memory_space<vmem>>, %arg6: memref<128x128xf32, #tpu.memory_space<vmem>>) attributes {dimension_semantics = [#tpu.dimension_semantics<parallel>, #tpu.dimension_semantics<arbitrary>], iteration_bounds = array<i64: 1, 1>, scalar_prefetch = 0 : i64, scratch_operands = 1 : i64, tpu.core_type = #tpu.core_type<tc>, window_params = [{transform_indices = @transform_0, window_bounds = array<i64: 128, 128>}, {transform_indices = @transform_1, window_bounds = array<i64: 128, 128>}, {pipeline_mode = #tpu.pipeline_mode<synchronous>, transform_indices = @transform_2, window_bounds = array<i64: 1, 128>}, {transform_indices = @transform_3, window_bounds = array<i64: 128, 128>}]} {
    %c0_i32 = arith.constant 0 : i32
    %0 = arith.cmpi eq, %arg1, %c0_i32 : i32
    %1 = arith.extui %0 : i1 to i32
    %c0_i32_0 = arith.constant 0 : i32
    %2 = arith.cmpi ne, %1, %c0_i32_0 : i32
    scf.if %2 {
      %cst_10 = arith.constant 0.000000e+00 : f32
      %12 = vector.broadcast %cst_10 : f32 to vector<128x128xf32>
      %c0_11 = arith.constant 0 : index
      %c0_12 = arith.constant 0 : index
      %13 = vector.load %arg6[%c0_11, %c0_12] : memref<128x128xf32, #tpu.memory_space<vmem>>, vector<128x128xf32>
      tpu.vector_store %arg6[%c0_11, %c0_12], %12 {strides = array<i32>} : memref<128x128xf32, #tpu.memory_space<vmem>>, vector<128x128xf32>,
    } else {
    }
    %c0 = arith.constant 0 : index
    %c0_1 = arith.constant 0 : index
    %3 = vector.load %arg6[%c0, %c0_1] : memref<128x128xf32, #tpu.memory_space<vmem>>, vector<128x128xf32>
    %c0_2 = arith.constant 0 : index
    %c0_3 = arith.constant 0 : index
    %4 = vector.load %arg2[%c0_2, %c0_3] : memref<128x128xbf16, #tpu.memory_space<vmem>>, vector<128x128xbf16>
    %c0_4 = arith.constant 0 : index
    %c0_5 = arith.constant 0 : index
    %5 = vector.load %arg3[%c0_4, %c0_5] : memref<128x128xbf16, #tpu.memory_space<vmem>>, vector<128x128xbf16>
    %cst = arith.constant dense<0.000000e+00> : vector<128x128xf32>
    %6 = tpu.matmul %4, %5, %cst {dimension_numbers = #tpu.dot_dimension_numbers<[1], [0], [0], [1], [0, 0, 1, 1], [], []>} : vector<128x128xbf16>, vector<128x128xbf16>, vector<128x128xf32> -> vector<128x128xf32>
    %7 = arith.addf %3, %6 : vector<128x128xf32>
    %c0_6 = arith.constant 0 : index
    %c0_7 = arith.constant 0 : index
    %8 = vector.load %arg6[%c0_6, %c0_7] : memref<128x128xf32, #tpu.memory_space<vmem>>, vector<128x128xf32>
    tpu.vector_store %arg6[%c0_6, %c0_7], %7 {strides = array<i32>} : memref<128x128xf32, #tpu.memory_space<vmem>>, vector<128x128xf32>,
    %c0_i32_8 = arith.constant 0 : i32
    %9 = arith.cmpi eq, %arg1, %c0_i32_8 : i32
    %10 = arith.extui %9 : i1 to i32
    %c0_i32_9 = arith.constant 0 : i32
    %11 = arith.cmpi ne, %10, %c0_i32_9 : i32
    scf.if %11 {
      %c0_10 = arith.constant 0 : index
      %c0_11 = arith.constant 0 : index
      %12 = vector.load %arg6[%c0_10, %c0_11] : memref<128x128xf32, #tpu.memory_space<vmem>>, vector<128x128xf32>
      %c0_12 = arith.constant 0 : index
      %c0_13 = arith.constant 0 : index
      %13 = vector.load %arg4[%c0_12, %c0_13] : memref<1x128xf32, #tpu.memory_space<vmem>>, vector<1x128xf32>
      %14 = vector.broadcast %13 : vector<1x128xf32> to vector<128x128xf32>
      %15 = arith.addf %12, %14 : vector<128x128xf32>
      %cst_14 = arith.constant 0.000000e+00 : f32
      %16 = vector.broadcast %cst_14 : f32 to vector<128x128xf32>
      %17 = arith.maximumf %15, %16 : vector<128x128xf32>
      %c0_15 = arith.constant 0 : index
      %c0_16 = arith.constant 0 : index
      %18 = vector.load %arg5[%c0_15, %c0_16] : memref<128x128xf32, #tpu.memory_space<vmem>>, vector<128x128xf32>
      tpu.vector_store %arg5[%c0_15, %c0_16], %17 {strides = array<i32>} : memref<128x128xf32, #tpu.memory_space<vmem>>, vector<128x128xf32>,
    } else {
    }
    return
  }
  func.func @transform_0(%arg0: i32, %arg1: i32) -> (i32, i32) {
    %c0_i32 = arith.constant 0 : i32
    return %arg0, %arg1 : i32, i32
  }
  func.func @transform_1(%arg0: i32, %arg1: i32) -> (i32, i32) {
    %c0_i32 = arith.constant 0 : i32
    %c0_i32_0 = arith.constant 0 : i32
    return %arg1, %c0_i32 : i32, i32
  }
  func.func @transform_2(%arg0: i32, %arg1: i32) -> (i32, i32) {
    %c0_i32 = arith.constant 0 : i32
    %c0_i32_0 = arith.constant 0 : i32
    %c0_i32_1 = arith.constant 0 : i32
    return %c0_i32, %c0_i32_0 : i32, i32
  }
  func.func @transform_3(%arg0: i32, %arg1: i32) -> (i32, i32) {
    %c0_i32 = arith.constant 0 : i32
    %c0_i32_0 = arith.constant 0 : i32
    return %arg0, %c0_i32 : i32, i32
  }
}

</mosaic_0001>

<bundles_post_ra>
// kernel: gconv_forward.4
= control target key start
LH: loop header
LB: loop body
LE: loop exit
PB: predicated region body
PF: predicated region fallthrough
CT: control target
= control target key end

     0   :  { %s551_s1 = inlined_call_operand.vmem [shape: bf16[128,128], index: 1, kind: input, shape index: {}]   ;;  %s552_s0 = inlined_call_operand.vmem [shape: f32[128,128], index: 0, kind: input, shape index: {}]   ;;  %s553_s2 = inlined_call_operand.vmem [shape: bf16[128,128], index: 2, kind: output, shape index: {}]  }
   0x1   :  { %v432_v0 = vld [vmem:[%s551_s1] sm:$0xff]   ;;  %v433_v1 = vld [vmem:[%s551_s1 + $0x8] sm:$0xff]   ;;  %v434_v2 = vld [vmem:[%s551_s1 + $0x10] sm:$0xff]  }
   0x2   :  { %384 = vmatprep.subr.bf16.mxu0 %v432_v0  ;;  %416 = vmatprep.subr.bf16.mxu1 %v432_v0  ;;  %v435_v3 = vld [vmem:[%s551_s1 + $0x18] sm:$0xff]   ;;  %v12_v4 = vld [vmem:[%s552_s0] sm:$0xff]  ;;  %v13_v5 = vld [vmem:[%s552_s0 + $0x8] sm:$0xff] }
   0x3   :  { %385 = vmatpush3.bf16.msra.mxu0 %v432_v0  ;;  %424 = vmatpush3.bf16.msra.mxu1 %v432_v0  ;;  %v20_v6 = vld [vmem:[%s552_s0 + $0x40] sm:$0xff]  ;;  %v28_v7 = vpack.c.bf16 %v13_v5, %v12_v4  ;;  %v21_v8 = vld [vmem:[%s552_s0 + $0x48] sm:$0xff]  ;;  %v438_v12 = vld [vmem:[%s551_s1 + $0x30] sm:$0xff]  }
   0x4   :  { %386 = vmatprep.subr.bf16.mxu0 %v433_v1  ;;  %417 = vmatprep.subr.bf16.mxu1 %v433_v1  ;;  %v32_v9 = vpack.c.bf16 %v21_v8, %v20_v6  ;;  %v436_v10 = vld [vmem:[%s551_s1 + $0x20] sm:$0xff]   ;;  %v437_v11 = vld [vmem:[%s551_s1 + $0x28] sm:$0xff]   ;;  %v439_v13 = vld [vmem:[%s551_s1 + $0x38] sm:$0xff]  }
   0x5   :  { %400 = vmatprep.mubr.bf16.mxu0 %v28_v7  ;;  %v14_v14 = vld [vmem:[%s552_s0 + $0x10] sm:$0xff]  ;;  %v15_v15 = vld [vmem:[%s552_s0 + $0x18] sm:$0xff]  ;;  %v16_v18 = vld [vmem:[%s552_s0 + $0x20] sm:$0xff] }
   0x6   :  { %408 = vmatprep.mubr.bf16.mxu1 %v32_v9  ;;  %v22_v16 = vld [vmem:[%s552_s0 + $0x50] sm:$0xff]  ;;  %v23_v17 = vld [vmem:[%s552_s0 + $0x58] sm:$0xff]  ;;  %v17_v19 = vld [vmem:[%s552_s0 + $0x28] sm:$0xff]  ;;  %v29_v22 = vpack.c.bf16 %v15_v15, %v14_v14 }
   0x7   :  { %387 = vmatpush3.bf16.msra.mxu0 %v433_v1  ;;  %425 = vmatpush3.bf16.msra.mxu1 %v433_v1  ;;  %v24_v20 = vld [vmem:[%s552_s0 + $0x60] sm:$0xff]  ;;  %v25_v21 = vld [vmem:[%s552_s0 + $0x68] sm:$0xff]  ;;  %v33_v23 = vpack.c.bf16 %v23_v17, %v22_v16  ;;  %v30_v24 = vpack.c.bf16 %v17_v19, %v16_v18  ;;  %v18_v26 = vld [vmem:[%s552_s0 + $0x30] sm:$0xff] }
   0x8   :  { %388 = vmatprep.subr.bf16.mxu0 %v434_v2  ;;  %418 = vmatprep.subr.bf16.mxu1 %v434_v2  ;;  %v34_v25 = vpack.c.bf16 %v25_v21, %v24_v20  ;;  %v19_v27 = vld [vmem:[%s552_s0 + $0x38] sm:$0xff]  ;;  %v26_v28 = vld [vmem:[%s552_s0 + $0x70] sm:$0xff] }
   0x9   :  { %v27_v29 = vld [vmem:[%s552_s0 + $0x78] sm:$0xff]  ;;  %v31_v30 = vpack.c.bf16 %v19_v27, %v18_v26 }
   0xa   :  { %v35_v31 = vpack.c.bf16 %v27_v29, %v26_v28 }
   0xb   :  { %389 = vmatpush3.bf16.msra.mxu0 %v434_v2  ;;  %426 = vmatpush3.bf16.msra.mxu1 %v434_v2 }
   0xc   :  { %390 = vmatprep.subr.bf16.mxu0 %v435_v3  ;;  %419 = vmatprep.subr.bf16.mxu1 %v435_v3 }
   0xf   :  { %391 = vmatpush3.bf16.msra.mxu0 %v435_v3  ;;  %427 = vmatpush3.bf16.msra.mxu1 %v435_v3 }
  0x10   :  { %392 = vmatprep.subr.bf16.mxu0 %v436_v10  ;;  %420 = vmatprep.subr.bf16.mxu1 %v436_v10 }
  0x13   :  { %393 = vmatpush3.bf16.msra.mxu0 %v436_v10  ;;  %428 = vmatpush3.bf16.msra.mxu1 %v436_v10 }
  0x14   :  { %394 = vmatprep.subr.bf16.mxu0 %v437_v11  ;;  %421 = vmatprep.subr.bf16.mxu1 %v437_v11 }
  0x17   :  { %395 = vmatpush3.bf16.msra.mxu0 %v437_v11  ;;  %429 = vmatpush3.bf16.msra.mxu1 %v437_v11 }
  0x18   :  { %396 = vmatprep.subr.bf16.mxu0 %v438_v12  ;;  %422 = vmatprep.subr.bf16.mxu1 %v438_v12 }
  0x1b   :  { %397 = vmatpush3.bf16.msra.mxu0 %v438_v12  ;;  %430 = vmatpush3.bf16.msra.mxu1 %v438_v12 }
  0x1c   :  { %398 = vmatprep.subr.bf16.mxu0 %v439_v13  ;;  %423 = vmatprep.subr.bf16.mxu1 %v439_v13 }
  0x1f   :  { %399 = vmatpush3.bf16.msra.mxu0 %v439_v13  ;;  %431 = vmatpush3.bf16.msra.mxu1 %v439_v13 }
  0x22   :  { %401 = vmatmul.mubr.bf16.vlgmr.msra.gmra.mrb[0].mxu0 %v29_v22  ;;  %409 = vmatmul.mubr.bf16.vlgmr.msra.gmra.mrb[0].mxu1 %v33_v23 }
  0x23   :  { %404 = vmatprep.mubr.bf16.mxu0 %v30_v24  ;;  %412 = vmatprep.mubr.bf16.mxu1 %v34_v25 }
  0x2a   :  { %405 = vmatmul.mubr.bf16.gmra.mrb[4].mxu0 %v31_v30  ;;  %413 = vmatmul.mubr.bf16.gmra.mrb[4].mxu1 %v35_v31 }
  0xf5   :  { %v402_v32 = vpop.f32.mrb[0].mxu0  ;;  %v410_v33 = vpop.f32.mrb[0].mxu1 }
  0xf6   :  { %v134_v34 = vpop.f32.mrb[1].mxu0  ;;  %v166_v35 = vpop.f32.mrb[1].mxu1 }
  0xf7   :  { %v403_v36 = vpop.f32.mrb[2].mxu0  ;;  %v411_v37 = vpop.f32.mrb[2].mxu1 }
  0xf8   :  { %v329_v38 = vpack.c.bf16 %v403_v36, %v402_v32  ;;  %v349_v39 = vpack.c.bf16 %v411_v37, %v410_v33  ;;  %v137_v40 = vpop.f32.mrb[3].mxu0  ;;  %v169_v41 = vpop.f32.mrb[3].mxu1 }
  0xf9   :  { %v324_v42 = vpack.c.bf16 %v137_v40, %v134_v34  ;;  %v344_v43 = vpack.c.bf16 %v169_v41, %v166_v35 }
  0xfa   :  { %361 = vst [vmem:[%s553_s2 + $0x8] sm:$0xff] %v329_v38   ;;  %365 = vst [vmem:[%s553_s2 + $0x28] sm:$0xff] %v349_v39  }
  0xfb   :  { %325 = vst [vmem:[%s553_s2] sm:$0xff] %v324_v42   ;;  %364 = vst [vmem:[%s553_s2 + $0x20] sm:$0xff] %v344_v43  }
  0xfd   :  { %v406_v44 = vpop.f32.mrb[4].mxu0  ;;  %v414_v45 = vpop.f32.mrb[4].mxu1 }
  0xfe   :  { %v150_v46 = vpop.f32.mrb[5].mxu0  ;;  %v182_v47 = vpop.f32.mrb[5].mxu1 }
  0xff   :  { %v407_v48 = vpop.f32.mrb[6].mxu0  ;;  %v415_v49 = vpop.f32.mrb[6].mxu1 }
 0x100   :  { %v339_v50 = vpack.c.bf16 %v407_v48, %v406_v44  ;;  %v359_v51 = vpack.c.bf16 %v415_v49, %v414_v45  ;;  %v153_v52 = vpop.f32.mrb[7].mxu0  ;;  %v185_v53 = vpop.f32.mrb[7].mxu1 }
 0x101   :  { %v334_v54 = vpack.c.bf16 %v153_v52, %v150_v46  ;;  %v354_v55 = vpack.c.bf16 %v185_v53, %v182_v47 }
 0x102   :  { %363 = vst [vmem:[%s553_s2 + $0x18] sm:$0xff] %v339_v50   ;;  %367 = vst [vmem:[%s553_s2 + $0x38] sm:$0xff] %v359_v51  }
 0x103   :  { %362 = vst [vmem:[%s553_s2 + $0x10] sm:$0xff] %v334_v54   ;;  %366 = vst [vmem:[%s553_s2 + $0x30] sm:$0xff] %v354_v55  }

// kernel: gconv_forward.5
= control target key start
LH: loop header
LB: loop body
LE: loop exit
PB: predicated region body
PF: predicated region fallthrough
CT: control target
= control target key end

     0   :  { %s602_s1 = inlined_call_operand.vmem [shape: bf16[128,128], index: 1, kind: input, shape index: {}]   ;;  %s603_s0 = inlined_call_operand.vmem [shape: bf16[128,128], index: 0, kind: input, shape index: {}]   ;;  %s604_s2 = inlined_call_operand.vmem [shape: f32[1,128], index: 2, kind: input, shape index: {}]   ;;  %s605_s3 = inlined_call_operand.vmem [shape: f32[128,128], index: 3, kind: output, shape index: {}]  }
   0x1   :  { %v467_v0 = vld [vmem:[%s602_s1] sm:$0xff]   ;;  %v468_v1 = vld [vmem:[%s602_s1 + $0x8] sm:$0xff]   ;;  %v469_v2 = vld [vmem:[%s602_s1 + $0x10] sm:$0xff]  }
   0x2   :  { %419 = vmatprep.subr.bf16.mxu0 %v467_v0  ;;  %451 = vmatprep.subr.bf16.mxu1 %v467_v0  ;;  %v470_v3 = vld [vmem:[%s602_s1 + $0x18] sm:$0xff]   ;;  %v475_v4 = vld [vmem:[%s603_s0] sm:$0xff]   ;;  %v472_v7 = vld [vmem:[%s602_s1 + $0x28] sm:$0xff]  }
   0x3   :  { %420 = vmatpush3.bf16.msra.mxu0 %v467_v0  ;;  %459 = vmatpush3.bf16.msra.mxu1 %v467_v0  ;;  %v476_v5 = vld [vmem:[%s603_s0 + $0x20] sm:$0xff]   ;;  %v473_v8 = vld [vmem:[%s602_s1 + $0x30] sm:$0xff]   ;;  %v474_v9 = vld [vmem:[%s602_s1 + $0x38] sm:$0xff]  }
   0x4   :  { %421 = vmatprep.subr.bf16.mxu0 %v468_v1  ;;  %452 = vmatprep.subr.bf16.mxu1 %v468_v1  ;;  %v471_v6 = vld [vmem:[%s602_s1 + $0x20] sm:$0xff]   ;;  %v477_v10 = vld [vmem:[%s603_s0 + $0x8] sm:$0xff]   ;;  %v479_v12 = vld [vmem:[%s603_s0 + $0x10] sm:$0xff]  }
   0x5   :  { %435 = vmatprep.mubr.bf16.mxu0 %v475_v4  ;;  %443 = vmatprep.mubr.bf16.mxu1 %v476_v5  ;;  %v478_v11 = vld [vmem:[%s603_s0 + $0x28] sm:$0xff]   ;;  %v480_v13 = vld [vmem:[%s603_s0 + $0x30] sm:$0xff]   ;;  %v481_v14 = vld [vmem:[%s603_s0 + $0x18] sm:$0xff]  }
   0x6   :  { %v482_v15 = vld [vmem:[%s603_s0 + $0x38] sm:$0xff]   ;;  %v402_v16 = vld [vmem:[%s604_s2] ss:$0 sm:$0xff] }
   0x7   :  { %422 = vmatpush3.bf16.msra.mxu0 %v468_v1  ;;  %460 = vmatpush3.bf16.msra.mxu1 %v468_v1 }
   0x8   :  { %423 = vmatprep.subr.bf16.mxu0 %v469_v2  ;;  %453 = vmatprep.subr.bf16.mxu1 %v469_v2 }
   0xb   :  { %424 = vmatpush3.bf16.msra.mxu0 %v469_v2  ;;  %461 = vmatpush3.bf16.msra.mxu1 %v469_v2 }
   0xc   :  { %425 = vmatprep.subr.bf16.mxu0 %v470_v3  ;;  %454 = vmatprep.subr.bf16.mxu1 %v470_v3 }
   0xf   :  { %426 = vmatpush3.bf16.msra.mxu0 %v470_v3  ;;  %462 = vmatpush3.bf16.msra.mxu1 %v470_v3 }
  0x10   :  { %427 = vmatprep.subr.bf16.mxu0 %v471_v6  ;;  %455 = vmatprep.subr.bf16.mxu1 %v471_v6 }
  0x13   :  { %428 = vmatpush3.bf16.msra.mxu0 %v471_v6  ;;  %463 = vmatpush3.bf16.msra.mxu1 %v471_v6 }
  0x14   :  { %429 = vmatprep.subr.bf16.mxu0 %v472_v7  ;;  %456 = vmatprep.subr.bf16.mxu1 %v472_v7 }
  0x17   :  { %430 = vmatpush3.bf16.msra.mxu0 %v472_v7  ;;  %464 = vmatpush3.bf16.msra.mxu1 %v472_v7 }
  0x18   :  { %431 = vmatprep.subr.bf16.mxu0 %v473_v8  ;;  %457 = vmatprep.subr.bf16.mxu1 %v473_v8 }
  0x1b   :  { %432 = vmatpush3.bf16.msra.mxu0 %v473_v8  ;;  %465 = vmatpush3.bf16.msra.mxu1 %v473_v8 }
  0x1c   :  { %433 = vmatprep.subr.bf16.mxu0 %v474_v9  ;;  %458 = vmatprep.subr.bf16.mxu1 %v474_v9 }
  0x1f   :  { %434 = vmatpush3.bf16.msra.mxu0 %v474_v9  ;;  %466 = vmatpush3.bf16.msra.mxu1 %v474_v9 }
  0x22   :  { %436 = vmatmul.mubr.bf16.vlgmr.msra.gmra.mrb[0].mxu0 %v477_v10  ;;  %444 = vmatmul.mubr.bf16.vlgmr.msra.gmra.mrb[0].mxu1 %v478_v11 }
  0x23   :  { %439 = vmatprep.mubr.bf16.mxu0 %v479_v12  ;;  %447 = vmatprep.mubr.bf16.mxu1 %v480_v13 }
  0x2a   :  { %440 = vmatmul.mubr.bf16.gmra.mrb[4].mxu0 %v481_v14  ;;  %448 = vmatmul.mubr.bf16.gmra.mrb[4].mxu1 %v482_v15 }
  0xf5   :  { %v437_v17 = vpop.f32.mrb[0].mxu0  ;;  %v445_v18 = vpop.f32.mrb[0].mxu1 }
  0xf6   :  { %v336_v19 = vadd.f32 %v437_v17, %v402_v16  ;;  %v344_v20 = vadd.f32 %v445_v18, %v402_v16  ;;  %v213_v21 = vpop.f32.mrb[1].mxu0  ;;  %v245_v22 = vpop.f32.mrb[1].mxu1 }
  0xf7   :  { %v334_v23 = vadd.f32 %v402_v16, %v213_v21  ;;  %v342_v24 = vadd.f32 %v402_v16, %v245_v22  ;;  %v438_v25 = vpop.f32.mrb[2].mxu0  ;;  %v446_v26 = vpop.f32.mrb[2].mxu1 }
  0xf8   :  { %v352_v27 = vmax.f32 %v336_v19, 0.0  ;;  %v360_v28 = vmax.f32 %v344_v20, 0.0  ;;  %v337_v29 = vadd.f32 %v438_v25, %v402_v16  ;;  %v345_v30 = vadd.f32 %v446_v26, %v402_v16  ;;  %v216_v31 = vpop.f32.mrb[3].mxu0  ;;  %v248_v32 = vpop.f32.mrb[3].mxu1 }
  0xf9   :  { %v350_v33 = vmax.f32 %v334_v23, 0.0  ;;  %v358_v34 = vmax.f32 %v342_v24, 0.0  ;;  %v335_v35 = vadd.f32 %v402_v16, %v216_v31  ;;  %v343_v36 = vadd.f32 %v402_v16, %v248_v32 }
  0xfa   :  { %368 = vst [vmem:[%s605_s3 + $0x10] sm:$0xff] %v352_v27  ;;  %376 = vst [vmem:[%s605_s3 + $0x50] sm:$0xff] %v360_v28  ;;  %v353_v37 = vmax.f32 %v337_v29, 0.0  ;;  %v361_v38 = vmax.f32 %v345_v30, 0.0 }
  0xfb   :  { %366 = vst [vmem:[%s605_s3] sm:$0xff] %v350_v33  ;;  %374 = vst [vmem:[%s605_s3 + $0x40] sm:$0xff] %v358_v34  ;;  %v351_v39 = vmax.f32 %v335_v35, 0.0  ;;  %v359_v40 = vmax.f32 %v343_v36, 0.0 }
  0xfc   :  { %369 = vst [vmem:[%s605_s3 + $0x18] sm:$0xff] %v353_v37  ;;  %377 = vst [vmem:[%s605_s3 + $0x58] sm:$0xff] %v361_v38 }
  0xfd   :  { %367 = vst [vmem:[%s605_s3 + $0x8] sm:$0xff] %v351_v39  ;;  %375 = vst [vmem:[%s605_s3 + $0x48] sm:$0xff] %v359_v40  ;;  %v441_v41 = vpop.f32.mrb[4].mxu0  ;;  %v449_v42 = vpop.f32.mrb[4].mxu1 }
  0xfe   :  { %v340_v43 = vadd.f32 %v441_v41, %v402_v16  ;;  %v348_v44 = vadd.f32 %v449_v42, %v402_v16  ;;  %v229_v45 = vpop.f32.mrb[5].mxu0  ;;  %v261_v46 = vpop.f32.mrb[5].mxu1 }
  0xff   :  { %v338_v47 = vadd.f32 %v402_v16, %v229_v45  ;;  %v346_v48 = vadd.f32 %v402_v16, %v261_v46  ;;  %v442_v49 = vpop.f32.mrb[6].mxu0  ;;  %v450_v50 = vpop.f32.mrb[6].mxu1 }
 0x100   :  { %v356_v51 = vmax.f32 %v340_v43, 0.0  ;;  %v364_v52 = vmax.f32 %v348_v44, 0.0  ;;  %v341_v53 = vadd.f32 %v442_v49, %v402_v16  ;;  %v349_v54 = vadd.f32 %v450_v50, %v402_v16  ;;  %v232_v55 = vpop.f32.mrb[7].mxu0  ;;  %v264_v56 = vpop.f32.mrb[7].mxu1 }
 0x101   :  { %v354_v57 = vmax.f32 %v338_v47, 0.0  ;;  %v362_v58 = vmax.f32 %v346_v48, 0.0  ;;  %v339_v59 = vadd.f32 %v402_v16, %v232_v55  ;;  %v347_v60 = vadd.f32 %v402_v16, %v264_v56 }
 0x102   :  { %372 = vst [vmem:[%s605_s3 + $0x30] sm:$0xff] %v356_v51  ;;  %380 = vst [vmem:[%s605_s3 + $0x70] sm:$0xff] %v364_v52  ;;  %v357_v61 = vmax.f32 %v341_v53, 0.0  ;;  %v365_v62 = vmax.f32 %v349_v54, 0.0 }
 0x103   :  { %370 = vst [vmem:[%s605_s3 + $0x20] sm:$0xff] %v354_v57  ;;  %378 = vst [vmem:[%s605_s3 + $0x60] sm:$0xff] %v362_v58  ;;  %v355_v63 = vmax.f32 %v339_v59, 0.0  ;;  %v363_v0 = vmax.f32 %v347_v60, 0.0 }
 0x104   :  { %373 = vst [vmem:[%s605_s3 + $0x38] sm:$0xff] %v357_v61  ;;  %381 = vst [vmem:[%s605_s3 + $0x78] sm:$0xff] %v365_v62 }
 0x105   :  { %371 = vst [vmem:[%s605_s3 + $0x28] sm:$0xff] %v355_v63  ;;  %379 = vst [vmem:[%s605_s3 + $0x68] sm:$0xff] %v363_v0 }

</bundles_post_ra>
